<compile_context>
chip_gen: v5e
topology: v5e:2x2
jax: 0.10.0
libtpu: 0.0.40
codegen_flags: <defaults>
</compile_context>

<pallas_src>
import math

import jax
import jax.numpy as jnp
from jax.experimental import pallas as pl
from jax.experimental.pallas import tpu as pltpu

N_CLUSTERS = 512
DIM = 32          # embedding dim ("hidden")
TILE_ROWS = 512   # output rows per grid step (= TILE_ROWS * k indices); sweep 512/1024
LANES = 128


def make_embed_cluster_centers(weight, tile_rows=TILE_ROWS):
    """Pallas-backed equivalent of nn.Embedding(n_clusters, dim).

    weight: (n_clusters, dim) float32 embedding table.
    Returns embed(x): integer array of any shape -> x.shape + (dim,) float32.
    Out-of-range indices produce all-zero rows (nn.Embedding would error).
    """
    n_clusters, dim = weight.shape
    k = LANES // math.gcd(dim, LANES)    # lookups packed per lane-dense row
    lane_w = k * dim                     # multiple of 128

    # The widened-table footprint grows as k^2 * table.  For dims with a small
    # power-of-two factor (e.g. dim=100 -> k=32 -> ~200 MiB table, 16K-wide
    # one-hot) fall back to a plain XLA gather instead of blowing VMEM.
    wide_bytes = (k * n_clusters) * lane_w * weight.dtype.itemsize
    if wide_bytes > (4 << 20):
        # TODO(synk): DMA-gather Pallas path for dims where the widened table is too big.
        return jax.jit(lambda x: jnp.take(weight, x.astype(jnp.int32), axis=0))

    # Block-diagonal widened table, built ONCE (not per call):
    #   W_wide[j*nc + c, j*dim + d] = W[c, d]
    w_wide = jnp.kron(jnp.eye(k, dtype=weight.dtype), weight)   # (k*nc, k*dim)

    @jax.jit
    def embed(x):
        orig_shape = x.shape
        idx_flat = x.reshape(-1).astype(jnp.int32)
        n = idx_flat.shape[0]

        pad = (-n) % k
        if pad:                      # at most k-1 dummy lookups; sliced off below
            idx_flat = jnp.pad(idx_flat, (0, pad))
        rows = idx_flat.shape[0] // k
        idx2d = idx_flat.reshape(rows, k)

        tile_r = min(tile_rows, rows)       # output rows per grid step
        n_tiles = pl.cdiv(rows, tile_r)     # Pallas clips the partial last block

        def kernel(idx_ref, emb_ref, out_ref):
            # idx_ref: (tile_r, k) int32 indices
            # emb_ref: (k*n_clusters, k*dim) block-diagonal table (resident block)
            # out_ref: (tile_r, k*dim) f32 -- lane-dense (k*dim % 128 == 0)
            idx = idx_ref[...]
            # Hoisted: one iota reused for all k compares (no per-j re-materialization).
            iota = jax.lax.broadcasted_iota(jnp.int32, (tile_r, n_clusters), 1)
            acc = jnp.zeros((tile_r, lane_w), jnp.float32)
            for j in range(k):
                onehot_j = (iota == idx[:, j:j + 1]).astype(emb_ref.dtype)
                acc = acc + jnp.dot(
                    onehot_j,
                    emb_ref[j * n_clusters:(j + 1) * n_clusters, :],
                    preferred_element_type=jnp.float32,
                )
            out_ref[...] = acc.astype(out_ref.dtype)

        out = pl.pallas_call(
            kernel,
            out_shape=jax.ShapeDtypeStruct((rows, lane_w), weight.dtype),
            grid_spec=pltpu.PrefetchScalarGridSpec(
                num_scalar_prefetch=0,
                grid=(n_tiles,),
                in_specs=[
                    pl.BlockSpec((tile_r, k), lambda i: (i, 0)),   # index tile
                    # Constant index map -> table block stays resident across steps.
                    pl.BlockSpec((k * n_clusters, lane_w), lambda i: (0, 0)),
                ],
                out_specs=pl.BlockSpec((tile_r, lane_w), lambda i: (i, 0)),
            ),
            compiler_params=pltpu.CompilerParams(
                dimension_semantics=("parallel",),
            ),
        )(idx2d, w_wide)

        # Row-major bytes of (rows, k*dim) == (rows*k, dim): free reshape.
        flat = out.reshape(rows * k, dim)
        if pad:                      # drop the k-padding tail (rare)
            flat = flat[:n]
        return flat.reshape(*orig_shape, dim)

    return embed


if __name__ == "__main__":
    key = jax.random.PRNGKey(0)
    k_idx, k_w, k_idx2 = jax.random.split(key, 3)

    # Deterministic parameter init: nn.Embedding default is N(0, 1).
    weight = jax.random.normal(k_w, (N_CLUSTERS, DIM), dtype=jnp.float32)
    embed = make_embed_cluster_centers(weight)

    # Small case: batch=2, seq=8 cluster ids -> single grid step.
    x = jax.random.randint(k_idx, (2, 8), 0, N_CLUSTERS, dtype=jnp.int32)
    out = jax.block_until_ready(embed(x))
    ref = jnp.take(weight, x, axis=0)
    assert out.shape == (2, 8, DIM), out.shape
    assert jnp.allclose(out, ref, atol=1e-6), "mismatch vs reference gather (small)"

    # Tiled case: 4096 indices -> rows=1024 -> 2 grid steps (megacore-balanced).
    x2 = jax.random.randint(k_idx2, (8, 512), 0, N_CLUSTERS, dtype=jnp.int32)
    out2 = jax.block_until_ready(embed(x2))
    ref2 = jnp.take(weight, x2, axis=0)
    assert out2.shape == (8, 512, DIM), out2.shape
    assert jnp.allclose(out2, ref2, atol=1e-6), "mismatch vs reference gather (tiled)"

    print("KERNEL_OK")
</pallas_src>

<mosaic_0001>
module attributes {stable_mosaic.version = 11 : i64} {
  func.func @kernel(%arg0: i32, %arg1: memref<4x4xi32, #tpu.memory_space<vmem>>, %arg2: memref<2048x128xf32, #tpu.memory_space<vmem>>, %arg3: memref<4x128xf32, #tpu.memory_space<vmem>>) attributes {dimension_semantics = [#tpu.dimension_semantics<parallel>], iteration_bounds = array<i64: 1>, scalar_prefetch = 0 : i64, scratch_operands = 0 : i64, tpu.core_type = #tpu.core_type<tc>, window_params = [{transform_indices = @transform_0, window_bounds = array<i64: 4, 4>}, {pipeline_mode = #tpu.pipeline_mode<synchronous>, transform_indices = @transform_1, window_bounds = array<i64: 2048, 128>}, {transform_indices = @transform_2, window_bounds = array<i64: 4, 128>}]} {
    %c0 = arith.constant 0 : index
    %c0_0 = arith.constant 0 : index
    %0 = vector.load %arg1[%c0, %c0_0] : memref<4x4xi32, #tpu.memory_space<vmem>>, vector<4x4xi32>
    %1 = tpu.iota {dimensions = array<i32: 1>} : vector<4x512xi32>
    %cst = arith.constant 0.000000e+00 : f32
    %2 = vector.broadcast %cst : f32 to vector<4x128xf32>
    %3 = vector.extract_strided_slice %0 {offsets = [0, 0], sizes = [4, 1], strides = [1, 1]} : vector<4x4xi32> to vector<4x1xi32>
    %4 = vector.broadcast %3 : vector<4x1xi32> to vector<4x512xi32>
    %5 = arith.cmpi eq, %1, %4 : vector<4x512xi32>
    %6 = arith.extui %5 : vector<4x512xi1> to vector<4x512xi32>
    %7 = arith.sitofp %6 : vector<4x512xi32> to vector<4x512xf32>
    %c0_1 = arith.constant 0 : index
    %c0_2 = arith.constant 0 : index
    %8 = vector.load %arg2[%c0_1, %c0_2] : memref<2048x128xf32, #tpu.memory_space<vmem>>, vector<512x128xf32>
    %cst_3 = arith.constant dense<0.000000e+00> : vector<4x128xf32>
    %9 = tpu.matmul %7, %8, %cst_3 {dimension_numbers = #tpu.dot_dimension_numbers<[1], [0], [0], [1], [0, 0, 1, 1], [], []>} : vector<4x512xf32>, vector<512x128xf32>, vector<4x128xf32> -> vector<4x128xf32>
    %10 = arith.addf %2, %9 : vector<4x128xf32>
    %11 = vector.extract_strided_slice %0 {offsets = [0, 1], sizes = [4, 1], strides = [1, 1]} : vector<4x4xi32> to vector<4x1xi32>
    %12 = vector.broadcast %11 : vector<4x1xi32> to vector<4x512xi32>
    %13 = arith.cmpi eq, %1, %12 : vector<4x512xi32>
    %14 = arith.extui %13 : vector<4x512xi1> to vector<4x512xi32>
    %15 = arith.sitofp %14 : vector<4x512xi32> to vector<4x512xf32>
    %c512 = arith.constant 512 : index
    %c0_4 = arith.constant 0 : index
    %16 = vector.load %arg2[%c512, %c0_4] : memref<2048x128xf32, #tpu.memory_space<vmem>>, vector<512x128xf32>
    %cst_5 = arith.constant dense<0.000000e+00> : vector<4x128xf32>
    %17 = tpu.matmul %15, %16, %cst_5 {dimension_numbers = #tpu.dot_dimension_numbers<[1], [0], [0], [1], [0, 0, 1, 1], [], []>} : vector<4x512xf32>, vector<512x128xf32>, vector<4x128xf32> -> vector<4x128xf32>
    %18 = arith.addf %10, %17 : vector<4x128xf32>
    %19 = vector.extract_strided_slice %0 {offsets = [0, 2], sizes = [4, 1], strides = [1, 1]} : vector<4x4xi32> to vector<4x1xi32>
    %20 = vector.broadcast %19 : vector<4x1xi32> to vector<4x512xi32>
    %21 = arith.cmpi eq, %1, %20 : vector<4x512xi32>
    %22 = arith.extui %21 : vector<4x512xi1> to vector<4x512xi32>
    %23 = arith.sitofp %22 : vector<4x512xi32> to vector<4x512xf32>
    %c1024 = arith.constant 1024 : index
    %c0_6 = arith.constant 0 : index
    %24 = vector.load %arg2[%c1024, %c0_6] : memref<2048x128xf32, #tpu.memory_space<vmem>>, vector<512x128xf32>
    %cst_7 = arith.constant dense<0.000000e+00> : vector<4x128xf32>
    %25 = tpu.matmul %23, %24, %cst_7 {dimension_numbers = #tpu.dot_dimension_numbers<[1], [0], [0], [1], [0, 0, 1, 1], [], []>} : vector<4x512xf32>, vector<512x128xf32>, vector<4x128xf32> -> vector<4x128xf32>
    %26 = arith.addf %18, %25 : vector<4x128xf32>
    %27 = vector.extract_strided_slice %0 {offsets = [0, 3], sizes = [4, 1], strides = [1, 1]} : vector<4x4xi32> to vector<4x1xi32>
    %28 = vector.broadcast %27 : vector<4x1xi32> to vector<4x512xi32>
    %29 = arith.cmpi eq, %1, %28 : vector<4x512xi32>
    %30 = arith.extui %29 : vector<4x512xi1> to vector<4x512xi32>
    %31 = arith.sitofp %30 : vector<4x512xi32> to vector<4x512xf32>
    %c1536 = arith.constant 1536 : index
    %c0_8 = arith.constant 0 : index
    %32 = vector.load %arg2[%c1536, %c0_8] : memref<2048x128xf32, #tpu.memory_space<vmem>>, vector<512x128xf32>
    %cst_9 = arith.constant dense<0.000000e+00> : vector<4x128xf32>
    %33 = tpu.matmul %31, %32, %cst_9 {dimension_numbers = #tpu.dot_dimension_numbers<[1], [0], [0], [1], [0, 0, 1, 1], [], []>} : vector<4x512xf32>, vector<512x128xf32>, vector<4x128xf32> -> vector<4x128xf32>
    %34 = arith.addf %26, %33 : vector<4x128xf32>
    %c0_10 = arith.constant 0 : index
    %c0_11 = arith.constant 0 : index
    %35 = vector.load %arg3[%c0_10, %c0_11] : memref<4x128xf32, #tpu.memory_space<vmem>>, vector<4x128xf32>
    tpu.vector_store %arg3[%c0_10, %c0_11], %34 {strides = array<i32>} : memref<4x128xf32, #tpu.memory_space<vmem>>, vector<4x128xf32>,
    return
  }
  func.func @transform_0(%arg0: i32) -> (i32, i32) {
    %c0_i32 = arith.constant 0 : i32
    %c0_i32_0 = arith.constant 0 : i32
    return %arg0, %c0_i32 : i32, i32
  }
  func.func @transform_1(%arg0: i32) -> (i32, i32) {
    %c0_i32 = arith.constant 0 : i32
    %c0_i32_0 = arith.constant 0 : i32
    %c0_i32_1 = arith.constant 0 : i32
    return %c0_i32, %c0_i32_0 : i32, i32
  }
  func.func @transform_2(%arg0: i32) -> (i32, i32) {
    %c0_i32 = arith.constant 0 : i32
    %c0_i32_0 = arith.constant 0 : i32
    return %arg0, %c0_i32 : i32, i32
  }
}

</mosaic_0001>

<bundles_post_ra>
// kernel: embed.1
= control target key start
LH: loop header
LB: loop body
LE: loop exit
PB: predicated region body
PF: predicated region fallthrough
CT: control target
= control target key end

     0   :  { %7 = vsyncpa [#allocation3], 0  ;;  %s748_s12 = smov [#allocation2]   ;;  %s749_s14 = smov 128   ;;  %s825_s0 = inlined_call_operand.vmem [shape: s32[4,4], index: 0, kind: input, shape index: {}]   ;;  %s826_s1 = inlined_call_operand.hbm [shape: f32[2048,128], index: 1, kind: input, shape index: {}]   ;;  %s827_s2 = inlined_call_operand.vmem [shape: f32[4,128], index: 2, kind: output, shape index: {}]  }
   0x1   :  { %s14_s11 = sshll.u32 %s826_s1, 4  ;;  %s16_s13 = sshll.u32 %s748_s12, 4  ;;  %s15_s11 = int_to_ptr.hbm [resolvable:$true] %s14_s11  ;;  %s17_s13 = int_to_ptr.vmem [resolvable:$true] %s16_s13 }
   0x2   :  { %s750_s15 = smov 8  }
   0x3   :  { %22 = dma.hbm_to_vmem [thread:$0]  %s15_s11, 32768, %s17_s13, [#allocation3], %s749_s14, %s749_s14, %s750_s15  }
   0x4   :  { %746 = dma.done.wait [#allocation3], 32768  }
   0x5   :  { %747 = vsyncadd [#allocation3], 4294934528  ;;  %v751_v0 = vmov 1   ;;  %v752_v1 = vmov 2   ;;  %v27_v2 = vld [vmem:[%s825_s0] sm:$0xf] }
   0x6   :  { %717 = vset.pattern.permute.xlu0 %v751_v0  ;;  %719 = vset.pattern.permute.xlu1 %v752_v1  ;;  %v142_v3 = vld [vmem:[#allocation2 + $0x278] sm:$0xff]  ;;  %v141_v7 = vld [vmem:[#allocation2 + $0x270] sm:$0xff]  ;;  %v140_v11 = vld [vmem:[#allocation2 + $0x268] sm:$0xff]  ;;  %v753_v20 = vmov 0   ;;  %v754_v24 = vmov 3  }
   0x7   :  { %v158_v4 = vld [vmem:[#allocation2 + $0x2f8] sm:$0xff]  ;;  %113 = vperm.xlu0 %717, %v27_v2   ;;  %352 = vperm.xlu1 %719, %v27_v2   ;;  %v157_v8 = vld [vmem:[#allocation2 + $0x2f0] sm:$0xff]  ;;  %v156_v12 = vld [vmem:[#allocation2 + $0x2e8] sm:$0xff] }
   0x8   :  { %v174_v5 = vld [vmem:[#allocation2 + $0x378] sm:$0xff]  ;;  %191 = vmatpush.msra.mxu0 %v142_v3  ;;  %211 = vmatpush.msra.mxu1 %v158_v4  ;;  %v173_v9 = vld [vmem:[#allocation2 + $0x370] sm:$0xff]  ;;  %v172_v13 = vld [vmem:[#allocation2 + $0x368] sm:$0xff] }
   0x9   :  { %v190_v6 = vld [vmem:[#allocation2 + $0x3f8] sm:$0xff]  ;;  %v189_v10 = vld [vmem:[#allocation2 + $0x3f0] sm:$0xff]  ;;  %231 = vmatpush.msra.mxu2 %v174_v5  ;;  %v188_v14 = vld [vmem:[#allocation2 + $0x3e8] sm:$0xff] }
   0xa   :  { %251 = vmatpush.msra.mxu3 %v190_v6  ;;  %192 = vmatpush.msra.mxu0 %v141_v7  ;;  %v139_v15 = vld [vmem:[#allocation2 + $0x260] sm:$0xff]  ;;  %v138_v19 = vld [vmem:[#allocation2 + $0x258] sm:$0xff]  ;;  %v137_v25 = vld [vmem:[#allocation2 + $0x250] sm:$0xff] }
   0xb   :  { %212 = vmatpush.msra.mxu1 %v157_v8  ;;  %232 = vmatpush.msra.mxu2 %v173_v9  ;;  %v155_v16 = vld [vmem:[#allocation2 + $0x2e0] sm:$0xff]  ;;  %v154_v21 = vld [vmem:[#allocation2 + $0x2d8] sm:$0xff]  ;;  %v153_v26 = vld [vmem:[#allocation2 + $0x2d0] sm:$0xff] }
   0xc   :  { %252 = vmatpush.msra.mxu3 %v189_v10  ;;  %193 = vmatpush.msra.mxu0 %v140_v11  ;;  %v171_v17 = vld [vmem:[#allocation2 + $0x360] sm:$0xff]  ;;  %v170_v22 = vld [vmem:[#allocation2 + $0x358] sm:$0xff]  ;;  %v169_v27 = vld [vmem:[#allocation2 + $0x350] sm:$0xff] }
   0xd   :  { %213 = vmatpush.msra.mxu1 %v156_v12  ;;  %233 = vmatpush.msra.mxu2 %v172_v13  ;;  %v187_v18 = vld [vmem:[#allocation2 + $0x3e0] sm:$0xff]  ;;  %v186_v23 = vld [vmem:[#allocation2 + $0x3d8] sm:$0xff]  ;;  %v185_v28 = vld [vmem:[#allocation2 + $0x3d0] sm:$0xff] }
   0xe   :  { %253 = vmatpush.msra.mxu3 %v188_v14  ;;  %194 = vmatpush.msra.mxu0 %v139_v15  ;;  %v136_v29 = vld [vmem:[#allocation2 + $0x248] sm:$0xff]  ;;  %v135_v33 = vld [vmem:[#allocation2 + $0x240] sm:$0xff]  ;;  %v134_v37 = vld [vmem:[#allocation2 + $0x238] sm:$0xff] }
   0xf   :  { %214 = vmatpush.msra.mxu1 %v155_v16  ;;  %718 = vset.pattern.permute.xlu0 %v753_v20  ;;  %v152_v30 = vld [vmem:[#allocation2 + $0x2c8] sm:$0xff]  ;;  %v151_v34 = vld [vmem:[#allocation2 + $0x2c0] sm:$0xff]  ;;  %v150_v38 = vld [vmem:[#allocation2 + $0x2b8] sm:$0xff] }
  0x10   :  { %234 = vmatpush.msra.mxu2 %v171_v17  ;;  %34 = vperm.xlu0 %718, %v27_v2   ;;  %v168_v31 = vld [vmem:[#allocation2 + $0x348] sm:$0xff]  ;;  %v167_v35 = vld [vmem:[#allocation2 + $0x340] sm:$0xff]  ;;  %v166_v39 = vld [vmem:[#allocation2 + $0x338] sm:$0xff] }
  0x11   :  { %254 = vmatpush.msra.mxu3 %v187_v18  ;;  %720 = vset.pattern.permute.xlu1 %v754_v24  ;;  %v184_v32 = vld [vmem:[#allocation2 + $0x3c8] sm:$0xff]  ;;  %v183_v36 = vld [vmem:[#allocation2 + $0x3c0] sm:$0xff]  ;;  %v182_v40 = vld [vmem:[#allocation2 + $0x3b8] sm:$0xff] }
  0x12   :  { %195 = vmatpush.msra.mxu0 %v138_v19  ;;  %215 = vmatpush.msra.mxu1 %v154_v21  ;;  %v133_v41 = vld [vmem:[#allocation2 + $0x230] sm:$0xff]  ;;  %v132_v45 = vld [vmem:[#allocation2 + $0x228] sm:$0xff]  ;;  %v131_v49 = vld [vmem:[#allocation2 + $0x220] sm:$0xff] }
  0x13   :  { %235 = vmatpush.msra.mxu2 %v170_v22  ;;  %255 = vmatpush.msra.mxu3 %v186_v23  ;;  %v149_v42 = vld [vmem:[#allocation2 + $0x2b0] sm:$0xff]  ;;  %v148_v46 = vld [vmem:[#allocation2 + $0x2a8] sm:$0xff]  ;;  %v147_v50 = vld [vmem:[#allocation2 + $0x2a0] sm:$0xff] }
  0x14   :  { %512 = vperm.xlu1 %720, %v27_v2   ;;  %196 = vmatpush.msra.mxu0 %v137_v25  ;;  %v165_v43 = vld [vmem:[#allocation2 + $0x330] sm:$0xff]  ;;  %v164_v47 = vld [vmem:[#allocation2 + $0x328] sm:$0xff]  ;;  %v163_v51 = vld [vmem:[#allocation2 + $0x320] sm:$0xff] }
  0x15   :  { %216 = vmatpush.msra.mxu1 %v153_v26  ;;  %236 = vmatpush.msra.mxu2 %v169_v27  ;;  %v181_v44 = vld [vmem:[#allocation2 + $0x3b0] sm:$0xff]  ;;  %v180_v48 = vld [vmem:[#allocation2 + $0x3a8] sm:$0xff]  ;;  %v179_v52 = vld [vmem:[#allocation2 + $0x3a0] sm:$0xff] }
  0x16   :  { %256 = vmatpush.msra.mxu3 %v185_v28  ;;  %197 = vmatpush.msra.mxu0 %v136_v29  ;;  %v130_v53 = vld [vmem:[#allocation2 + $0x218] sm:$0xff]  ;;  %v129_v57 = vld [vmem:[#allocation2 + $0x210] sm:$0xff]  ;;  %v128_v61 = vld [vmem:[#allocation2 + $0x208] sm:$0xff] }
  0x17   :  { %217 = vmatpush.msra.mxu1 %v152_v30  ;;  %237 = vmatpush.msra.mxu2 %v168_v31  ;;  %v146_v54 = vld [vmem:[#allocation2 + $0x298] sm:$0xff]  ;;  %v145_v58 = vld [vmem:[#allocation2 + $0x290] sm:$0xff]  ;;  %v144_v62 = vld [vmem:[#allocation2 + $0x288] sm:$0xff] }
  0x18   :  { %257 = vmatpush.msra.mxu3 %v184_v32  ;;  %198 = vmatpush.msra.mxu0 %v135_v33  ;;  %v162_v55 = vld [vmem:[#allocation2 + $0x318] sm:$0xff]  ;;  %v161_v59 = vld [vmem:[#allocation2 + $0x310] sm:$0xff]  ;;  %v160_v63 = vld [vmem:[#allocation2 + $0x308] sm:$0xff] }
  0x19   :  { %218 = vmatpush.msra.mxu1 %v151_v34  ;;  %238 = vmatpush.msra.mxu2 %v167_v35  ;;  %v178_v56 = vld [vmem:[#allocation2 + $0x398] sm:$0xff]  ;;  %v177_v60 = vld [vmem:[#allocation2 + $0x390] sm:$0xff]  ;;  %v176_v0 = vld [vmem:[#allocation2 + $0x388] sm:$0xff] }
  0x1a   :  { %258 = vmatpush.msra.mxu3 %v183_v36  ;;  %199 = vmatpush.msra.mxu0 %v134_v37  ;;  %v127_v1 = vld [vmem:[#allocation2 + $0x200] sm:$0xff]  ;;  %v63_v5 = vld [vmem:[#allocation2 + $0x78] sm:$0xff]  ;;  %v62_v9 = vld [vmem:[#allocation2 + $0x70] sm:$0xff] }
  0x1b   :  { %219 = vmatpush.msra.mxu1 %v150_v38  ;;  %239 = vmatpush.msra.mxu2 %v166_v39  ;;  %v143_v2 = vld [vmem:[#allocation2 + $0x280] sm:$0xff]  ;;  %v79_v6 = vld [vmem:[#allocation2 + $0xf8] sm:$0xff]  ;;  %v78_v10 = vld [vmem:[#allocation2 + $0xf0] sm:$0xff] }
  0x1c   :  { %259 = vmatpush.msra.mxu3 %v182_v40  ;;  %200 = vmatpush.msra.mxu0 %v133_v41  ;;  %v159_v3 = vld [vmem:[#allocation2 + $0x300] sm:$0xff]  ;;  %v95_v7 = vld [vmem:[#allocation2 + $0x178] sm:$0xff]  ;;  %v94_v11 = vld [vmem:[#allocation2 + $0x170] sm:$0xff] }
  0x1d   :  { %220 = vmatpush.msra.mxu1 %v149_v42  ;;  %240 = vmatpush.msra.mxu2 %v165_v43  ;;  %v175_v4 = vld [vmem:[#allocation2 + $0x380] sm:$0xff]  ;;  %v111_v8 = vld [vmem:[#allocation2 + $0x1f8] sm:$0xff]  ;;  %v110_v12 = vld [vmem:[#allocation2 + $0x1f0] sm:$0xff] }
  0x1e   :  { %260 = vmatpush.msra.mxu3 %v181_v44  ;;  %201 = vmatpush.msra.mxu0 %v132_v45  ;;  %v61_v13 = vld [vmem:[#allocation2 + $0x68] sm:$0xff]  ;;  %v60_v17 = vld [vmem:[#allocation2 + $0x60] sm:$0xff]  ;;  %v59_v21 = vld [vmem:[#allocation2 + $0x58] sm:$0xff] }
  0x1f   :  { %221 = vmatpush.msra.mxu1 %v148_v46  ;;  %241 = vmatpush.msra.mxu2 %v164_v47  ;;  %v77_v14 = vld [vmem:[#allocation2 + $0xe8] sm:$0xff]  ;;  %v76_v18 = vld [vmem:[#allocation2 + $0xe0] sm:$0xff]  ;;  %v75_v22 = vld [vmem:[#allocation2 + $0xd8] sm:$0xff] }
  0x20   :  { %261 = vmatpush.msra.mxu3 %v180_v48  ;;  %202 = vmatpush.msra.mxu0 %v131_v49  ;;  %v93_v15 = vld [vmem:[#allocation2 + $0x168] sm:$0xff]  ;;  %v92_v19 = vld [vmem:[#allocation2 + $0x160] sm:$0xff]  ;;  %v91_v23 = vld [vmem:[#allocation2 + $0x158] sm:$0xff] }
  0x21   :  { %222 = vmatpush.msra.mxu1 %v147_v50  ;;  %242 = vmatpush.msra.mxu2 %v163_v51  ;;  %v109_v16 = vld [vmem:[#allocation2 + $0x1e8] sm:$0xff]  ;;  %v108_v20 = vld [vmem:[#allocation2 + $0x1e0] sm:$0xff]  ;;  %v107_v25 = vld [vmem:[#allocation2 + $0x1d8] sm:$0xff] }
  0x22   :  { %262 = vmatpush.msra.mxu3 %v179_v52  ;;  %203 = vmatpush.msra.mxu0 %v130_v53  ;;  %v58_v26 = vld [vmem:[#allocation2 + $0x50] sm:$0xff]  ;;  %v57_v30 = vld [vmem:[#allocation2 + $0x48] sm:$0xff]  ;;  %v56_v34 = vld [vmem:[#allocation2 + $0x40] sm:$0xff] }
  0x23   :  { %223 = vmatpush.msra.mxu1 %v146_v54  ;;  %243 = vmatpush.msra.mxu2 %v162_v55  ;;  %v74_v27 = vld [vmem:[#allocation2 + $0xd0] sm:$0xff]  ;;  %v73_v31 = vld [vmem:[#allocation2 + $0xc8] sm:$0xff]  ;;  %v72_v35 = vld [vmem:[#allocation2 + $0xc0] sm:$0xff] }
  0x24   :  { %263 = vmatpush.msra.mxu3 %v178_v56  ;;  %204 = vmatpush.msra.mxu0 %v129_v57  ;;  %v90_v28 = vld [vmem:[#allocation2 + $0x150] sm:$0xff]  ;;  %v89_v32 = vld [vmem:[#allocation2 + $0x148] sm:$0xff]  ;;  %v88_v36 = vld [vmem:[#allocation2 + $0x140] sm:$0xff] }
  0x25   :  { %224 = vmatpush.msra.mxu1 %v145_v58  ;;  %244 = vmatpush.msra.mxu2 %v161_v59  ;;  %v106_v29 = vld [vmem:[#allocation2 + $0x1d0] sm:$0xff]  ;;  %v105_v33 = vld [vmem:[#allocation2 + $0x1c8] sm:$0xff]  ;;  %v104_v37 = vld [vmem:[#allocation2 + $0x1c0] sm:$0xff] }
  0x26   :  { %264 = vmatpush.msra.mxu3 %v177_v60  ;;  %205 = vmatpush.msra.mxu0 %v128_v61  ;;  %v55_v38 = vld [vmem:[#allocation2 + $0x38] sm:$0xff]  ;;  %v54_v42 = vld [vmem:[#allocation2 + $0x30] sm:$0xff]  ;;  %v53_v46 = vld [vmem:[#allocation2 + $0x28] sm:$0xff] }
  0x27   :  { %225 = vmatpush.msra.mxu1 %v144_v62  ;;  %245 = vmatpush.msra.mxu2 %v160_v63  ;;  %v71_v39 = vld [vmem:[#allocation2 + $0xb8] sm:$0xff]  ;;  %v70_v43 = vld [vmem:[#allocation2 + $0xb0] sm:$0xff]  ;;  %v69_v47 = vld [vmem:[#allocation2 + $0xa8] sm:$0xff] }
  0x28   :  { %265 = vmatpush.msra.mxu3 %v176_v0  ;;  %206 = vmatpush.msra.mxu0 %v127_v1  ;;  %v87_v40 = vld [vmem:[#allocation2 + $0x138] sm:$0xff]  ;;  %v86_v44 = vld [vmem:[#allocation2 + $0x130] sm:$0xff]  ;;  %v85_v48 = vld [vmem:[#allocation2 + $0x128] sm:$0xff] }
  0x29   :  { %226 = vmatpush.msra.mxu1 %v143_v2  ;;  %246 = vmatpush.msra.mxu2 %v159_v3  ;;  %v103_v41 = vld [vmem:[#allocation2 + $0x1b8] sm:$0xff]  ;;  %v102_v45 = vld [vmem:[#allocation2 + $0x1b0] sm:$0xff]  ;;  %v101_v49 = vld [vmem:[#allocation2 + $0x1a8] sm:$0xff] }
  0x2a   :  { %266 = vmatpush.msra.mxu3 %v175_v4  ;;  %271 = vmatpush.msrb.mxu0 %v63_v5  ;;  %v52_v50 = vld [vmem:[#allocation2 + $0x20] sm:$0xff]  ;;  %v51_v54 = vld [vmem:[#allocation2 + $0x18] sm:$0xff]  ;;  %v50_v58 = vld [vmem:[#allocation2 + $0x10] sm:$0xff] }
  0x2b   :  { %291 = vmatpush.msrb.mxu1 %v79_v6  ;;  %311 = vmatpush.msrb.mxu2 %v95_v7  ;;  %v68_v51 = vld [vmem:[#allocation2 + $0xa0] sm:$0xff]  ;;  %v67_v55 = vld [vmem:[#allocation2 + $0x98] sm:$0xff]  ;;  %v66_v59 = vld [vmem:[#allocation2 + $0x90] sm:$0xff]  ;;  %v28_v6 = vlaneseq }
  0x2c   :  { %331 = vmatpush.msrb.mxu3 %v111_v8  ;;  %272 = vmatpush.msrb.mxu0 %v62_v9  ;;  %v84_v52 = vld [vmem:[#allocation2 + $0x120] sm:$0xff]  ;;  %v83_v56 = vld [vmem:[#allocation2 + $0x118] sm:$0xff]  ;;  %v82_v60 = vld [vmem:[#allocation2 + $0x110] sm:$0xff] }
  0x2d   :  { %292 = vmatpush.msrb.mxu1 %v78_v10  ;;  %312 = vmatpush.msrb.mxu2 %v94_v11  ;;  %v100_v53 = vld [vmem:[#allocation2 + $0x1a0] sm:$0xff]  ;;  %v99_v57 = vld [vmem:[#allocation2 + $0x198] sm:$0xff]  ;;  %v98_v61 = vld [vmem:[#allocation2 + $0x190] sm:$0xff]  ;;  %v779_v7 = vand.u32 127, %v28_v6 }
  0x2e   :  { %332 = vmatpush.msrb.mxu3 %v110_v12  ;;  %273 = vmatpush.msrb.mxu0 %v61_v13  ;;  %v49_v62 = vld [vmem:[#allocation2 + $0x8] sm:$0xff]  ;;  %v48_v2 = vld [vmem:[#allocation2] sm:$0xff]  ;;  %v381_v11 = vld [vmem:[#allocation2 + $0x478] sm:$0xff]  ;;  %v755_v13 = vmov 1.0  }
  0x2f   :  { %293 = vmatpush.msrb.mxu1 %v77_v14  ;;  %313 = vmatpush.msrb.mxu2 %v93_v15  ;;  %v65_v63 = vld [vmem:[#allocation2 + $0x88] sm:$0xff]  ;;  %v64_v3 = vld [vmem:[#allocation2 + $0x80] sm:$0xff]  ;;  %v782_v8 = vadd.s32 128, %v779_v7  ;;  %v785_v9 = vadd.s32 256, %v779_v7  ;;  %v788_v10 = vadd.s32 384, %v779_v7  ;;  %v397_v12 = vld [vmem:[#allocation2 + $0x4f8] sm:$0xff] }
  0x30   :  { %333 = vmatpush.msrb.mxu3 %v109_v16  ;;  %274 = vmatpush.msrb.mxu0 %v60_v17  ;;  %v81_v0 = vld [vmem:[#allocation2 + $0x108] sm:$0xff]  ;;  %v80_v4 = vld [vmem:[#allocation2 + $0x100] sm:$0xff]  ;;  %v413_v14 = vld [vmem:[#allocation2 + $0x578] sm:$0xff] }
  0x31   :  { %294 = vmatpush.msrb.mxu1 %v76_v18  ;;  %314 = vmatpush.msrb.mxu2 %v92_v19  ;;  %v97_v1 = vld [vmem:[#allocation2 + $0x188] sm:$0xff]  ;;  %v96_v5 = vld [vmem:[#allocation2 + $0x180] sm:$0xff]  ;;  %v429_v15 = vld [vmem:[#allocation2 + $0x5f8] sm:$0xff] }
  0x32   :  { %334 = vmatpush.msrb.mxu3 %v108_v20  ;;  %275 = vmatpush.msrb.mxu0 %v59_v21  ;;  %v380_v16 = vld [vmem:[#allocation2 + $0x470] sm:$0xff]  ;;  %v379_v20 = vld [vmem:[#allocation2 + $0x468] sm:$0xff] }
  0x33   :  { %295 = vmatpush.msrb.mxu1 %v75_v22  ;;  %315 = vmatpush.msrb.mxu2 %v91_v23  ;;  %v396_v17 = vld [vmem:[#allocation2 + $0x4f0] sm:$0xff]  ;;  %v395_v21 = vld [vmem:[#allocation2 + $0x4e8] sm:$0xff] }
  0x34   :  { %335 = vmatpush.msrb.mxu3 %v107_v25  ;;  %276 = vmatpush.msrb.mxu0 %v58_v26  ;;  %v412_v18 = vld [vmem:[#allocation2 + $0x570] sm:$0xff]  ;;  %v411_v22 = vld [vmem:[#allocation2 + $0x568] sm:$0xff]  ;;  %v378_v25 = vld [vmem:[#allocation2 + $0x460] sm:$0xff] }
  0x35   :  { %296 = vmatpush.msrb.mxu1 %v74_v27  ;;  %316 = vmatpush.msrb.mxu2 %v90_v28  ;;  %v428_v19 = vld [vmem:[#allocation2 + $0x5f0] sm:$0xff]  ;;  %v427_v23 = vld [vmem:[#allocation2 + $0x5e8] sm:$0xff]  ;;  %v394_v26 = vld [vmem:[#allocation2 + $0x4e0] sm:$0xff] }
  0x36   :  { %336 = vmatpush.msrb.mxu3 %v106_v29  ;;  %277 = vmatpush.msrb.mxu0 %v57_v30  ;;  %v410_v27 = vld [vmem:[#allocation2 + $0x560] sm:$0xff]  ;;  %v377_v30 = vld [vmem:[#allocation2 + $0x458] sm:$0xff]  ;;  %v367_v6 = vld [vmem:[#allocation2 + $0x408] sm:$0xff] }
  0x37   :  { %297 = vmatpush.msrb.mxu1 %v73_v31  ;;  %317 = vmatpush.msrb.mxu2 %v89_v32  ;;  %v426_v28 = vld [vmem:[#allocation2 + $0x5e0] sm:$0xff]  ;;  %v393_v31 = vld [vmem:[#allocation2 + $0x4d8] sm:$0xff] }
  0x38   :  { %337 = vmatpush.msrb.mxu3 %v105_v33  ;;  %278 = vmatpush.msrb.mxu0 %v56_v34  ;;  %v409_v32 = vld [vmem:[#allocation2 + $0x558] sm:$0xff]  ;;  %v376_v34 = vld [vmem:[#allocation2 + $0x450] sm:$0xff] }
  0x39   :  { %298 = vmatpush.msrb.mxu1 %v72_v35  ;;  %318 = vmatpush.msrb.mxu2 %v88_v36  ;;  %v425_v33 = vld [vmem:[#allocation2 + $0x5d8] sm:$0xff]  ;;  %v392_v35 = vld [vmem:[#allocation2 + $0x4d0] sm:$0xff] }
  0x3a   :  { %338 = vmatpush.msrb.mxu3 %v104_v37  ;;  %279 = vmatpush.msrb.mxu0 %v55_v38  ;;  %v408_v36 = vld [vmem:[#allocation2 + $0x550] sm:$0xff]  ;;  %v375_v38 = vld [vmem:[#allocation2 + $0x448] sm:$0xff] }
  0x3b   :  { %299 = vmatpush.msrb.mxu1 %v71_v39  ;;  %319 = vmatpush.msrb.mxu2 %v87_v40  ;;  %v424_v37 = vld [vmem:[#allocation2 + $0x5d0] sm:$0xff]  ;;  %v391_v39 = vld [vmem:[#allocation2 + $0x4c8] sm:$0xff] }
  0x3c   :  { %339 = vmatpush.msrb.mxu3 %v103_v41  ;;  %280 = vmatpush.msrb.mxu0 %v54_v42  ;;  %v407_v40 = vld [vmem:[#allocation2 + $0x548] sm:$0xff]  ;;  %v374_v42 = vld [vmem:[#allocation2 + $0x440] sm:$0xff] }
  0x3d   :  { %300 = vmatpush.msrb.mxu1 %v70_v43  ;;  %320 = vmatpush.msrb.mxu2 %v86_v44  ;;  %v423_v41 = vld [vmem:[#allocation2 + $0x5c8] sm:$0xff]  ;;  %v390_v43 = vld [vmem:[#allocation2 + $0x4c0] sm:$0xff] }
  0x3e   :  { %340 = vmatpush.msrb.mxu3 %v102_v45  ;;  %281 = vmatpush.msrb.mxu0 %v53_v46  ;;  %v406_v44 = vld [vmem:[#allocation2 + $0x540] sm:$0xff]  ;;  %v373_v46 = vld [vmem:[#allocation2 + $0x438] sm:$0xff] }
  0x3f   :  { %301 = vmatpush.msrb.mxu1 %v69_v47  ;;  %321 = vmatpush.msrb.mxu2 %v85_v48  ;;  %v422_v45 = vld [vmem:[#allocation2 + $0x5c0] sm:$0xff]  ;;  %v389_v47 = vld [vmem:[#allocation2 + $0x4b8] sm:$0xff] }
  0x40   :  { %341 = vmatpush.msrb.mxu3 %v101_v49  ;;  %282 = vmatpush.msrb.mxu0 %v52_v50  ;;  %v405_v48 = vld [vmem:[#allocation2 + $0x538] sm:$0xff]  ;;  %v372_v50 = vld [vmem:[#allocation2 + $0x430] sm:$0xff] }
  0x41   :  { %302 = vmatpush.msrb.mxu1 %v68_v51  ;;  %322 = vmatpush.msrb.mxu2 %v84_v52  ;;  %v421_v49 = vld [vmem:[#allocation2 + $0x5b8] sm:$0xff]  ;;  %v388_v51 = vld [vmem:[#allocation2 + $0x4b0] sm:$0xff] }
  0x42   :  { %342 = vmatpush.msrb.mxu3 %v100_v53  ;;  %283 = vmatpush.msrb.mxu0 %v51_v54  ;;  %v404_v52 = vld [vmem:[#allocation2 + $0x530] sm:$0xff]  ;;  %v371_v54 = vld [vmem:[#allocation2 + $0x428] sm:$0xff] }
  0x43   :  { %303 = vmatpush.msrb.mxu1 %v67_v55  ;;  %323 = vmatpush.msrb.mxu2 %v83_v56  ;;  %v420_v53 = vld [vmem:[#allocation2 + $0x5b0] sm:$0xff]  ;;  %v387_v55 = vld [vmem:[#allocation2 + $0x4a8] sm:$0xff] }
  0x44   :  { %343 = vmatpush.msrb.mxu3 %v99_v57  ;;  %284 = vmatpush.msrb.mxu0 %v50_v58  ;;  %v403_v56 = vld [vmem:[#allocation2 + $0x528] sm:$0xff]  ;;  %v370_v58 = vld [vmem:[#allocation2 + $0x420] sm:$0xff] }
  0x45   :  { %304 = vmatpush.msrb.mxu1 %v66_v59  ;;  %324 = vmatpush.msrb.mxu2 %v82_v60  ;;  %v419_v57 = vld [vmem:[#allocation2 + $0x5a8] sm:$0xff]  ;;  %v386_v59 = vld [vmem:[#allocation2 + $0x4a0] sm:$0xff] }
  0x46   :  { %344 = vmatpush.msrb.mxu3 %v98_v61  ;;  %285 = vmatpush.msrb.mxu0 %v49_v62  ;;  %v402_v60 = vld [vmem:[#allocation2 + $0x520] sm:$0xff]  ;;  %v369_v62 = vld [vmem:[#allocation2 + $0x418] sm:$0xff] }
  0x47   :  { %305 = vmatpush.msrb.mxu1 %v65_v63  ;;  %325 = vmatpush.msrb.mxu2 %v81_v0  ;;  %v418_v61 = vld [vmem:[#allocation2 + $0x5a0] sm:$0xff]  ;;  %v385_v63 = vld [vmem:[#allocation2 + $0x498] sm:$0xff] }
  0x48   :  { %345 = vmatpush.msrb.mxu3 %v97_v1  ;;  %721 = vset.pattern.permute.xlu0 %v754_v24  ;;  %v401_v0 = vld [vmem:[#allocation2 + $0x518] sm:$0xff] }
  0x49   :  { %286 = vmatpush.msrb.mxu0 %v48_v2  ;;  %306 = vmatpush.msrb.mxu1 %v64_v3  ;;  %v417_v1 = vld [vmem:[#allocation2 + $0x598] sm:$0xff]  ;;  %v368_v2 = vld [vmem:[#allocation2 + $0x410] sm:$0xff] }
  0x4a   :  { %326 = vmatpush.msrb.mxu2 %v80_v4  ;;  %346 = vmatpush.msrb.mxu3 %v96_v5  ;;  %v384_v3 = vld [vmem:[#allocation2 + $0x490] sm:$0xff] }
  0x4b   :  { %v400_v4 = vld [vmem:[#allocation2 + $0x510] sm:$0xff] }
  0x4c   :  { %v416_v5 = vld [vmem:[#allocation2 + $0x590] sm:$0xff] }
  0x79   :  { %v114_v24 = vpop.permute.xlu0 %113 }
  0x7a   :  { %vm115_vm0 = vcmp.eq.s32.totalorder %v779_v7, %v114_v24  ;;  %vm116_vm1 = vcmp.eq.s32.totalorder %v782_v8, %v114_v24  ;;  %vm117_vm2 = vcmp.eq.s32.totalorder %v785_v9, %v114_v24  ;;  %vm118_vm3 = vcmp.eq.s32.totalorder %v788_v10, %v114_v24  ;;  %v383_v24 = vld [vmem:[#allocation2 + $0x488] sm:$0xff] }
  0x7b   :  { %685 = vmatmul.msk.f32.vlgmr.msra.gmra.mxu0 %vm115_vm0, %v755_v13  ;;  %686 = vmatmul.msk.f32.vlgmr.msra.gmra.mxu1 %vm116_vm1, %v755_v13 }
  0x7c   :  { %687 = vmatmul.msk.f32.vlgmr.msra.gmra.mxu2 %vm117_vm2, %v755_v13  ;;  %688 = vmatmul.msk.f32.vlgmr.msra.gmra.mxu3 %vm118_vm3, %v755_v13 }
  0x7d   :  { %430 = vmatpush.msra.mxu0 %v381_v11  ;;  %450 = vmatpush.msra.mxu1 %v397_v12  ;;  %v399_v11 = vld [vmem:[#allocation2 + $0x508] sm:$0xff] }
  0x7e   :  { %470 = vmatpush.msra.mxu2 %v413_v14  ;;  %490 = vmatpush.msra.mxu3 %v429_v15  ;;  %v415_v12 = vld [vmem:[#allocation2 + $0x588] sm:$0xff]  ;;  %v353_v14 = vpop.permute.xlu1 %352  ;;  %v366_v15 = vld [vmem:[#allocation2 + $0x400] sm:$0xff] }
  0x7f   :  { %431 = vmatpush.msra.mxu0 %v380_v16  ;;  %451 = vmatpush.msra.mxu1 %v396_v17  ;;  %v382_v16 = vld [vmem:[#allocation2 + $0x480] sm:$0xff]  ;;  %vm356_vm8 = vcmp.eq.s32.totalorder %v785_v9, %v353_v14  ;;  %vm357_vm9 = vcmp.eq.s32.totalorder %v788_v10, %v353_v14  ;;  %vm354_vm10 = vcmp.eq.s32.totalorder %v779_v7, %v353_v14 }
  0x80   :  { %471 = vmatpush.msra.mxu2 %v412_v18  ;;  %491 = vmatpush.msra.mxu3 %v428_v19  ;;  %v398_v17 = vld [vmem:[#allocation2 + $0x500] sm:$0xff]  ;;  %v541_v19 = vld [vmem:[#allocation2 + $0x678] sm:$0xff]  ;;  %vm355_vm11 = vcmp.eq.s32.totalorder %v782_v8, %v353_v14  ;;  %v560_v14 = vld [vmem:[#allocation2 + $0x710] sm:$0xff] }
  0x81   :  { %432 = vmatpush.msra.mxu0 %v379_v20  ;;  %452 = vmatpush.msra.mxu1 %v395_v21  ;;  %v414_v18 = vld [vmem:[#allocation2 + $0x580] sm:$0xff]  ;;  %v557_v20 = vld [vmem:[#allocation2 + $0x6f8] sm:$0xff] }
  0x82   :  { %472 = vmatpush.msra.mxu2 %v411_v22  ;;  %492 = vmatpush.msra.mxu3 %v427_v23  ;;  %v35_v29 = vpop.permute.xlu0 %34  ;;  %v573_v21 = vld [vmem:[#allocation2 + $0x778] sm:$0xff]  ;;  %v540_v23 = vld [vmem:[#allocation2 + $0x670] sm:$0xff] }
  0x83   :  { %433 = vmatpush.msra.mxu0 %v378_v25  ;;  %453 = vmatpush.msra.mxu1 %v394_v26  ;;  %vm38_vm4 = vcmp.eq.s32.totalorder %v785_v9, %v35_v29  ;;  %vm36_vm5 = vcmp.eq.s32.totalorder %v779_v7, %v35_v29  ;;  %vm39_vm6 = vcmp.eq.s32.totalorder %v788_v10, %v35_v29  ;;  %v589_v22 = vld [vmem:[#allocation2 + $0x7f8] sm:$0xff]  ;;  %v556_v25 = vld [vmem:[#allocation2 + $0x6f0] sm:$0xff] }
  0x84   :  { %473 = vmatpush.msra.mxu2 %v410_v27  ;;  %493 = vmatpush.msra.mxu3 %v426_v28  ;;  %vm37_vm7 = vcmp.eq.s32.totalorder %v782_v8, %v35_v29  ;;  %v572_v26 = vld [vmem:[#allocation2 + $0x770] sm:$0xff]  ;;  %v539_v28 = vld [vmem:[#allocation2 + $0x668] sm:$0xff] }
  0x85   :  { %434 = vmatpush.msra.mxu0 %v377_v30  ;;  %454 = vmatpush.msra.mxu1 %v393_v31  ;;  %v588_v27 = vld [vmem:[#allocation2 + $0x7f0] sm:$0xff]  ;;  %v555_v29 = vld [vmem:[#allocation2 + $0x6e8] sm:$0xff] }
  0x86   :  { %474 = vmatpush.msra.mxu2 %v409_v32  ;;  %494 = vmatpush.msra.mxu3 %v425_v33  ;;  %v571_v30 = vld [vmem:[#allocation2 + $0x768] sm:$0xff]  ;;  %v538_v32 = vld [vmem:[#allocation2 + $0x660] sm:$0xff] }
  0x87   :  { %691 = vmatmul.msk.f32.vlgmr.msrb.gmra.mxu2 %vm38_vm4, %v755_v13  ;;  %689 = vmatmul.msk.f32.vlgmr.msrb.gmra.mxu0 %vm36_vm5, %v755_v13  ;;  %v587_v31 = vld [vmem:[#allocation2 + $0x7e8] sm:$0xff]  ;;  %v554_v33 = vld [vmem:[#allocation2 + $0x6e0] sm:$0xff] }
  0x88   :  { %435 = vmatpush.msra.mxu0 %v376_v34  ;;  %455 = vmatpush.msra.mxu1 %v392_v35  ;;  %v570_v34 = vld [vmem:[#allocation2 + $0x760] sm:$0xff] }
  0x89   :  { %475 = vmatpush.msra.mxu2 %v408_v36  ;;  %495 = vmatpush.msra.mxu3 %v424_v37  ;;  %v586_v35 = vld [vmem:[#allocation2 + $0x7e0] sm:$0xff]  ;;  %v537_v36 = vld [vmem:[#allocation2 + $0x658] sm:$0xff] }
  0x8a   :  { %692 = vmatmul.msk.f32.vlgmr.msrb.gmra.mxu3 %vm39_vm6, %v755_v13  ;;  %690 = vmatmul.msk.f32.vlgmr.msrb.gmra.mxu1 %vm37_vm7, %v755_v13  ;;  %v553_v37 = vld [vmem:[#allocation2 + $0x6d8] sm:$0xff] }
  0x8b   :  { %436 = vmatpush.msra.mxu0 %v375_v38  ;;  %456 = vmatpush.msra.mxu1 %v391_v39  ;;  %v569_v38 = vld [vmem:[#allocation2 + $0x758] sm:$0xff] }
  0x8c   :  { %476 = vmatpush.msra.mxu2 %v407_v40  ;;  %496 = vmatpush.msra.mxu3 %v423_v41  ;;  %v585_v39 = vld [vmem:[#allocation2 + $0x7d8] sm:$0xff]  ;;  %v536_v40 = vld [vmem:[#allocation2 + $0x650] sm:$0xff] }
  0x8d   :  { %437 = vmatpush.msra.mxu0 %v374_v42  ;;  %457 = vmatpush.msra.mxu1 %v390_v43  ;;  %v552_v41 = vld [vmem:[#allocation2 + $0x6d0] sm:$0xff] }
  0x8e   :  { %477 = vmatpush.msra.mxu2 %v406_v44  ;;  %497 = vmatpush.msra.mxu3 %v422_v45  ;;  %v568_v42 = vld [vmem:[#allocation2 + $0x750] sm:$0xff]  ;;  %v535_v44 = vld [vmem:[#allocation2 + $0x648] sm:$0xff] }
  0x8f   :  { %438 = vmatpush.msra.mxu0 %v373_v46  ;;  %458 = vmatpush.msra.mxu1 %v389_v47  ;;  %v584_v43 = vld [vmem:[#allocation2 + $0x7d0] sm:$0xff]  ;;  %v551_v45 = vld [vmem:[#allocation2 + $0x6c8] sm:$0xff] }
  0x90   :  { %478 = vmatpush.msra.mxu2 %v405_v48  ;;  %498 = vmatpush.msra.mxu3 %v421_v49  ;;  %v567_v46 = vld [vmem:[#allocation2 + $0x748] sm:$0xff]  ;;  %v534_v48 = vld [vmem:[#allocation2 + $0x640] sm:$0xff] }
  0x91   :  { %439 = vmatpush.msra.mxu0 %v372_v50  ;;  %459 = vmatpush.msra.mxu1 %v388_v51  ;;  %v583_v47 = vld [vmem:[#allocation2 + $0x7c8] sm:$0xff]  ;;  %v550_v49 = vld [vmem:[#allocation2 + $0x6c0] sm:$0xff] }
  0x92   :  { %479 = vmatpush.msra.mxu2 %v404_v52  ;;  %499 = vmatpush.msra.mxu3 %v420_v53  ;;  %v566_v50 = vld [vmem:[#allocation2 + $0x740] sm:$0xff]  ;;  %v533_v52 = vld [vmem:[#allocation2 + $0x638] sm:$0xff] }
  0x93   :  { %440 = vmatpush.msra.mxu0 %v371_v54  ;;  %460 = vmatpush.msra.mxu1 %v387_v55  ;;  %v582_v51 = vld [vmem:[#allocation2 + $0x7c0] sm:$0xff]  ;;  %v549_v53 = vld [vmem:[#allocation2 + $0x6b8] sm:$0xff] }
  0x94   :  { %480 = vmatpush.msra.mxu2 %v403_v56  ;;  %500 = vmatpush.msra.mxu3 %v419_v57  ;;  %v565_v54 = vld [vmem:[#allocation2 + $0x738] sm:$0xff]  ;;  %v532_v56 = vld [vmem:[#allocation2 + $0x630] sm:$0xff] }
  0x95   :  { %441 = vmatpush.msra.mxu0 %v370_v58  ;;  %461 = vmatpush.msra.mxu1 %v386_v59  ;;  %v581_v55 = vld [vmem:[#allocation2 + $0x7b8] sm:$0xff]  ;;  %v548_v57 = vld [vmem:[#allocation2 + $0x6b0] sm:$0xff] }
  0x96   :  { %481 = vmatpush.msra.mxu2 %v402_v60  ;;  %501 = vmatpush.msra.mxu3 %v418_v61  ;;  %v564_v58 = vld [vmem:[#allocation2 + $0x730] sm:$0xff]  ;;  %v531_v60 = vld [vmem:[#allocation2 + $0x628] sm:$0xff] }
  0x97   :  { %442 = vmatpush.msra.mxu0 %v369_v62  ;;  %462 = vmatpush.msra.mxu1 %v385_v63  ;;  %v580_v59 = vld [vmem:[#allocation2 + $0x7b0] sm:$0xff]  ;;  %v547_v61 = vld [vmem:[#allocation2 + $0x6a8] sm:$0xff] }
  0x98   :  { %482 = vmatpush.msra.mxu2 %v401_v0  ;;  %502 = vmatpush.msra.mxu3 %v417_v1  ;;  %v563_v62 = vld [vmem:[#allocation2 + $0x728] sm:$0xff]  ;;  %v530_v0 = vld [vmem:[#allocation2 + $0x620] sm:$0xff] }
  0x99   :  { %443 = vmatpush.msra.mxu0 %v368_v2  ;;  %463 = vmatpush.msra.mxu1 %v384_v3  ;;  %v579_v63 = vld [vmem:[#allocation2 + $0x7a8] sm:$0xff]  ;;  %v546_v1 = vld [vmem:[#allocation2 + $0x6a0] sm:$0xff] }
  0x9a   :  { %483 = vmatpush.msra.mxu2 %v400_v4  ;;  %503 = vmatpush.msra.mxu3 %v416_v5  ;;  %v562_v2 = vld [vmem:[#allocation2 + $0x720] sm:$0xff]  ;;  %v529_v4 = vld [vmem:[#allocation2 + $0x618] sm:$0xff] }
  0x9b   :  { %444 = vmatpush.msra.mxu0 %v367_v6  ;;  %464 = vmatpush.msra.mxu1 %v383_v24  ;;  %v578_v3 = vld [vmem:[#allocation2 + $0x7a0] sm:$0xff]  ;;  %v545_v5 = vld [vmem:[#allocation2 + $0x698] sm:$0xff] }
  0x9c   :  { %484 = vmatpush.msra.mxu2 %v399_v11  ;;  %504 = vmatpush.msra.mxu3 %v415_v12  ;;  %v561_v6 = vld [vmem:[#allocation2 + $0x718] sm:$0xff]  ;;  %v528_v11 = vld [vmem:[#allocation2 + $0x610] sm:$0xff] }
  0x9d   :  { %445 = vmatpush.msra.mxu0 %v366_v15  ;;  %465 = vmatpush.msra.mxu1 %v382_v16  ;;  %v577_v24 = vld [vmem:[#allocation2 + $0x798] sm:$0xff]  ;;  %v544_v12 = vld [vmem:[#allocation2 + $0x690] sm:$0xff]  ;;  %v527_v16 = vld [vmem:[#allocation2 + $0x608] sm:$0xff] }
  0x9e   :  { %485 = vmatpush.msra.mxu2 %v398_v17  ;;  %505 = vmatpush.msra.mxu3 %v414_v18  ;;  %v576_v15 = vld [vmem:[#allocation2 + $0x790] sm:$0xff]  ;;  %v543_v17 = vld [vmem:[#allocation2 + $0x688] sm:$0xff] }
  0x9f   :  { %699 = vmatmul.msk.f32.vlgmr.msra.gmra.mxu2 %vm356_vm8, %v755_v13  ;;  %590 = vmatpush.msrb.mxu0 %v541_v19  ;;  %v559_v18 = vld [vmem:[#allocation2 + $0x708] sm:$0xff] }
  0xa0   :  { %610 = vmatpush.msrb.mxu1 %v557_v20  ;;  %630 = vmatpush.msrb.mxu2 %v573_v21  ;;  %v575_v19 = vld [vmem:[#allocation2 + $0x788] sm:$0xff]  ;;  %v513_v20 = vpop.permute.xlu1 %512  ;;  %v526_v21 = vld [vmem:[#allocation2 + $0x600] sm:$0xff] }
  0xa1   :  { %650 = vmatpush.msrb.mxu3 %v589_v22  ;;  %591 = vmatpush.msrb.mxu0 %v540_v23  ;;  %v542_v22 = vld [vmem:[#allocation2 + $0x680] sm:$0xff]  ;;  %vm514_vm12 = vcmp.eq.s32.totalorder %v779_v7, %v513_v20  ;;  %vm515_vm13 = vcmp.eq.s32.totalorder %v782_v8, %v513_v20  ;;  %vm516_vm14 = vcmp.eq.s32.totalorder %v785_v9, %v513_v20 }
  0xa2   :  { %700 = vmatmul.msk.f32.vlgmr.msra.gmra.mxu3 %vm357_vm9, %v755_v13  ;;  %611 = vmatpush.msrb.mxu1 %v556_v25  ;;  %v558_v23 = vld [vmem:[#allocation2 + $0x700] sm:$0xff]  ;;  %vm517_vm15 = vcmp.eq.s32.totalorder %v788_v10, %v513_v20 }
  0xa3   :  { %631 = vmatpush.msrb.mxu2 %v572_v26  ;;  %651 = vmatpush.msrb.mxu3 %v588_v27  ;;  %v574_v25 = vld [vmem:[#allocation2 + $0x780] sm:$0xff] }
  0xa4   :  { %697 = vmatmul.msk.f32.vlgmr.msra.gmra.mxu0 %vm354_vm10, %v755_v13  ;;  %698 = vmatmul.msk.f32.vlgmr.msra.gmra.mxu1 %vm355_vm11, %v755_v13 }
  0xa5   :  { %592 = vmatpush.msrb.mxu0 %v539_v28  ;;  %612 = vmatpush.msrb.mxu1 %v555_v29 }
  0xa6   :  { %632 = vmatpush.msrb.mxu2 %v571_v30  ;;  %652 = vmatpush.msrb.mxu3 %v587_v31 }
  0xa7   :  { %593 = vmatpush.msrb.mxu0 %v538_v32  ;;  %613 = vmatpush.msrb.mxu1 %v554_v33 }
  0xa8   :  { %633 = vmatpush.msrb.mxu2 %v570_v34  ;;  %653 = vmatpush.msrb.mxu3 %v586_v35 }
  0xa9   :  { %594 = vmatpush.msrb.mxu0 %v537_v36  ;;  %614 = vmatpush.msrb.mxu1 %v553_v37 }
  0xaa   :  { %634 = vmatpush.msrb.mxu2 %v569_v38  ;;  %654 = vmatpush.msrb.mxu3 %v585_v39 }
  0xab   :  { %595 = vmatpush.msrb.mxu0 %v536_v40  ;;  %615 = vmatpush.msrb.mxu1 %v552_v41 }
  0xac   :  { %635 = vmatpush.msrb.mxu2 %v568_v42  ;;  %655 = vmatpush.msrb.mxu3 %v584_v43 }
  0xad   :  { %596 = vmatpush.msrb.mxu0 %v535_v44  ;;  %616 = vmatpush.msrb.mxu1 %v551_v45 }
  0xae   :  { %636 = vmatpush.msrb.mxu2 %v567_v46  ;;  %656 = vmatpush.msrb.mxu3 %v583_v47 }
  0xaf   :  { %597 = vmatpush.msrb.mxu0 %v534_v48  ;;  %617 = vmatpush.msrb.mxu1 %v550_v49 }
  0xb0   :  { %637 = vmatpush.msrb.mxu2 %v566_v50  ;;  %657 = vmatpush.msrb.mxu3 %v582_v51 }
  0xb1   :  { %598 = vmatpush.msrb.mxu0 %v533_v52  ;;  %618 = vmatpush.msrb.mxu1 %v549_v53 }
  0xb2   :  { %638 = vmatpush.msrb.mxu2 %v565_v54  ;;  %658 = vmatpush.msrb.mxu3 %v581_v55 }
  0xb3   :  { %599 = vmatpush.msrb.mxu0 %v532_v56  ;;  %619 = vmatpush.msrb.mxu1 %v548_v57 }
  0xb4   :  { %639 = vmatpush.msrb.mxu2 %v564_v58  ;;  %659 = vmatpush.msrb.mxu3 %v580_v59 }
  0xb5   :  { %600 = vmatpush.msrb.mxu0 %v531_v60  ;;  %620 = vmatpush.msrb.mxu1 %v547_v61 }
  0xb6   :  { %640 = vmatpush.msrb.mxu2 %v563_v62  ;;  %660 = vmatpush.msrb.mxu3 %v579_v63 }
  0xb7   :  { %601 = vmatpush.msrb.mxu0 %v530_v0  ;;  %621 = vmatpush.msrb.mxu1 %v546_v1 }
  0xb8   :  { %641 = vmatpush.msrb.mxu2 %v562_v2  ;;  %661 = vmatpush.msrb.mxu3 %v578_v3 }
  0xb9   :  { %602 = vmatpush.msrb.mxu0 %v529_v4  ;;  %622 = vmatpush.msrb.mxu1 %v545_v5 }
  0xba   :  { %642 = vmatpush.msrb.mxu2 %v561_v6  ;;  %662 = vmatpush.msrb.mxu3 %v577_v24 }
  0xbb   :  { %603 = vmatpush.msrb.mxu0 %v528_v11  ;;  %623 = vmatpush.msrb.mxu1 %v544_v12 }
  0xbc   :  { %643 = vmatpush.msrb.mxu2 %v560_v14  ;;  %663 = vmatpush.msrb.mxu3 %v576_v15 }
  0xbd   :  { %604 = vmatpush.msrb.mxu0 %v527_v16  ;;  %624 = vmatpush.msrb.mxu1 %v543_v17 }
  0xbe   :  { %644 = vmatpush.msrb.mxu2 %v559_v18  ;;  %664 = vmatpush.msrb.mxu3 %v575_v19 }
  0xbf   :  { %605 = vmatpush.msrb.mxu0 %v526_v21  ;;  %625 = vmatpush.msrb.mxu1 %v542_v22 }
  0xc0   :  { %645 = vmatpush.msrb.mxu2 %v558_v23  ;;  %665 = vmatpush.msrb.mxu3 %v574_v25 }
  0xc1   :  { %705 = vmatmul.msk.f32.vlgmr.msrb.gmra.mxu0 %vm514_vm12, %v755_v13  ;;  %706 = vmatmul.msk.f32.vlgmr.msrb.gmra.mxu1 %vm515_vm13, %v755_v13 }
  0xc2   :  { %707 = vmatmul.msk.f32.vlgmr.msrb.gmra.mxu2 %vm516_vm14, %v755_v13  ;;  %708 = vmatmul.msk.f32.vlgmr.msrb.gmra.mxu3 %vm517_vm15, %v755_v13 }
  0xf8   :  { %v208_v26 = vpop.f32.mrf.mxu0  ;;  %v228_v7 = vpop.f32.mrf.mxu1 }
  0xf9   :  { %v229_v28 = vadd.f32 %v228_v7, %v208_v26 }
  0xff   :  { %v248_v27 = vpop.f32.mrf.mxu2  ;;  %v268_v8 = vpop.f32.mrf.mxu3 }
 0x100   :  { %v249_v10 = vadd.f32 %v248_v27, %v229_v28 }
 0x102   :  { %v269_v31 = vadd.f32 %v268_v8, %v249_v10 }
 0x104   :  { %v288_v9 = vpop.f32.mrf.mxu0 }
 0x105   :  { %v289_v35 = vadd.f32 %v288_v9, %v269_v31 }
 0x107   :  { %v308_v29 = vpop.f32.mrf.mxu1 }
 0x108   :  { %v309_v38 = vadd.f32 %v308_v29, %v289_v35 }
 0x10a   :  { %v328_v30 = vpop.f32.mrf.mxu2 }
 0x10b   :  { %v329_v42 = vadd.f32 %v328_v30, %v309_v38 }
 0x10d   :  { %v348_v32 = vpop.f32.mrf.mxu3 }
 0x10e   :  { %v349_v46 = vadd.f32 %v348_v32, %v329_v42 }
 0x121   :  { %v447_v33 = vpop.f32.mrf.mxu0  ;;  %v467_v34 = vpop.f32.mrf.mxu1 }
 0x122   :  { %v468_v36 = vadd.f32 %v467_v34, %v447_v33  ;;  %v487_v37 = vpop.f32.mrf.mxu2 }
 0x124   :  { %v488_v40 = vadd.f32 %v487_v37, %v468_v36 }
 0x125   :  { %v507_v39 = vpop.f32.mrf.mxu3 }
 0x126   :  { %v508_v43 = vadd.f32 %v507_v39, %v488_v40 }
 0x128   :  { %v510_v49 = vadd.f32 %v508_v43, %v349_v46 }
 0x13e   :  { %v607_v13 = vpop.f32.mrf.mxu0  ;;  %v627_v41 = vpop.f32.mrf.mxu1 }
 0x13f   :  { %v628_v44 = vadd.f32 %v627_v41, %v607_v13 }
 0x145   :  { %v647_v45 = vpop.f32.mrf.mxu2  ;;  %v667_v48 = vpop.f32.mrf.mxu3 }
 0x146   :  { %v648_v47 = vadd.f32 %v647_v45, %v628_v44 }
 0x148   :  { %v668_v50 = vadd.f32 %v667_v48, %v648_v47 }
 0x14a   :  { %v670_v51 = vadd.f32 %v668_v50, %v510_v49 }
 0x14c   :  { %671 = vst [vmem:[%s827_s2] sm:$0xf] %v670_v51 }
 0x14d   :  { %676 = vsyncpa [#allocation3], 1 }

</bundles_post_ra>
